<compile_context>
chip_gen: v7x
topology: tpu7x:2x2x1
jax: 0.10.0
libtpu: 0.0.40
codegen_flags: <defaults>
</compile_context>

<pallas_src>
import jax
import jax.numpy as jnp
from jax.experimental import pallas as pl
from jax.experimental.pallas import tpu as pltpu

BN_EPS = 1e-5


# ----------------------------- kernels --------------------------------------


def _bn_relu_fc(h, bnb, wf, bf):
    """BatchNorm1d (training-mode batch stats) + ReLU + fc, f32 math."""
    mean = jnp.mean(h, axis=0, keepdims=True)
    d = h - mean
    var = jnp.mean(d * d, axis=0, keepdims=True)            # centered variance
    scale = bnb[1:2, :] * jax.lax.rsqrt(var + BN_EPS)        # rsqrt -> EUP
    hn = jnp.maximum(d * scale + bnb[2:3, :], 0.0)           # BN affine + ReLU
    return (jnp.dot(hn.astype(wf.dtype), wf,
                    preferred_element_type=jnp.float32) + bf)


def mlp_head_single_kernel(x_ref, wp_ref, bnb_ref, wf_ref, bf_ref, o_ref):
    # Single grid step: whole problem resident in VMEM; no scratch / pl.when.
    h = jnp.dot(x_ref[...], wp_ref[...],
                preferred_element_type=jnp.float32) + bnb_ref[0:1, :]
    o_ref[...] = _bn_relu_fc(h, bnb_ref[...], wf_ref[...], bf_ref[...])


def mlp_head_tiled_kernel(x_ref, wp_ref, bnb_ref, wf_ref, bf_ref, o_ref,
                          acc_ref):
    # E reduction tiled over a 1-D "arbitrary" grid; (B, P) f32 accumulator
    # stays resident; BN + ReLU + fc run once on the last step.
    k = pl.program_id(0)

    @pl.when(k == 0)
    def _init():
        acc_ref[...] = jnp.zeros_like(acc_ref)

    acc_ref[...] += jnp.dot(x_ref[...], wp_ref[...],
                            preferred_element_type=jnp.float32)

    @pl.when(k == pl.num_programs(0) - 1)
    def _finalize():
        h = acc_ref[...] + bnb_ref[0:1, :]
        o_ref[...] = _bn_relu_fc(h, bnb_ref[...], wf_ref[...], bf_ref[...])


# ----------------------------- planning -------------------------------------


def _vmem_limit_bytes():
    """Generation-aware VMEM request: ~3/4 of capacity, capped at 96 MiB."""
    try:
        cap = pltpu.get_tpu_info().vmem_capacity_bytes
    except Exception:
        cap = 64 * 1024 * 1024          # conservative (v7x per-TC VMEM)
    return int(min(96 * 1024 * 1024, (cap * 3) // 4))


def _plan_tk(B, E, P, Cpad, vmem_limit, max_tk, allow_single_step):
    """Return None for the single-step path, else the E tile size (mult of 128)."""
    bpe = 2                              # bf16 bytes per element
    resident = (P * Cpad * bpe           # wf
                + Cpad * 4               # bf
                + 3 * P * 4              # packed bp/gamma/beta
                + 2 * B * Cpad * 4       # output (double-buffer headroom)
                + B * P * 4)             # accumulator / h
    budget = int(vmem_limit * 0.7)
    single_total = 2 * (B * E + E * P) * bpe + resident
    if allow_single_step and single_total <= budget:
        return None                      # single grid step, no E tiling
    per_col = 2 * (B + P) * bpe          # double-buffered x + wp bytes / E col
    tk = (budget - resident) // per_col
    tk = max(128, min(int(max_tk), int(tk)))
    return (tk // 128) * 128


def _resident_spec(block_shape, single_buffer):
    index_map = lambda k: (0,) * len(block_shape)
    if single_buffer:
        # Grid-invariant operand: one buffer is enough, saves VMEM.
        return pl.BlockSpec(block_shape, index_map,
                            pipeline_mode=pl.Buffered(1))
    return pl.BlockSpec(block_shape, index_map)


# ----------------------------- forward --------------------------------------


def mlp_head_forward(x_nchw, params, *, max_tk=2048, allow_single_step=True):
    """x_nchw: (B, C, H, W) float32. Returns (B, num_classes) float32."""
    B = x_nchw.shape[0]
    # backbone == identity here; then torch .flatten(start_dim=1).
    x_flat = x_nchw.reshape(B, -1).astype(jnp.bfloat16)
    E = x_flat.shape[1]

    wp = params["wp"].astype(jnp.bfloat16)                       # (E, P)
    wf = params["wf"].astype(jnp.bfloat16)                       # (P, C)
    bnb = jnp.concatenate(
        [params["bp"], params["gamma"], params["beta"]],
        axis=0).astype(jnp.float32)                              # (3, P)
    bf = params["bf"].astype(jnp.float32)                        # (1, C)

    P = wp.shape[1]
    C = wf.shape[1]

    # Lane-dense fc output (unmasked vst, full MXU N); sliced back at the end.
    Cpad = ((C + 127) // 128) * 128
    if Cpad != C:
        wf = jnp.pad(wf, ((0, 0), (0, Cpad - C)))
        bf = jnp.pad(bf, ((0, 0), (0, Cpad - C)))

    vmem_limit = _vmem_limit_bytes()
    tk = _plan_tk(B, E, P, Cpad, vmem_limit, max_tk, allow_single_step)

    flops = 2 * B * E * P + 2 * B * P * Cpad
    bytes_accessed = (B * E * 2 + E * P * 2 + P * Cpad * 2
                      + (3 * P + Cpad) * 4 + B * Cpad * 4)
    cost = pl.CostEstimate(flops=flops, transcendentals=P,
                           bytes_accessed=bytes_accessed)
    out_shape = jax.ShapeDtypeStruct((B, Cpad), jnp.float32)
    cparams = pltpu.CompilerParams(
        dimension_semantics=("arbitrary",),      # E is a reduction axis
        vmem_limit_bytes=vmem_limit)

    if tk is None:
        # --- single-step fast path: everything resident, zero step overhead.
        out_padded = pl.pallas_call(
            mlp_head_single_kernel,
            out_shape=out_shape,
            grid_spec=pltpu.PrefetchScalarGridSpec(
                num_scalar_prefetch=0,
                grid=(1,),
                in_specs=[
                    pl.BlockSpec((B, E), lambda k: (0, 0)),
                    pl.BlockSpec((E, P), lambda k: (0, 0)),
                    pl.BlockSpec((3, P), lambda k: (0, 0)),
                    pl.BlockSpec((P, Cpad), lambda k: (0, 0)),
                    pl.BlockSpec((1, Cpad), lambda k: (0, 0)),
                ],
                out_specs=pl.BlockSpec((B, Cpad), lambda k: (0, 0)),
            ),
            compiler_params=cparams,
            cost_estimate=cost,
        )(x_flat, wp, bnb, wf, bf)
        return out_padded[:, :C]

    # --- tiled path: stream x / wp along E, resident (B, P) f32 accumulator.
    E_pad = ((E + tk - 1) // tk) * tk
    if E_pad != E:     # zero cols of x / zero rows of wp add nothing to acc
        x_flat = jnp.pad(x_flat, ((0, 0), (0, E_pad - E)))
        wp = jnp.pad(wp, ((0, E_pad - E), (0, 0)))

    def _call(single_buffer):
        grid_spec = pltpu.PrefetchScalarGridSpec(
            num_scalar_prefetch=0,
            grid=(E_pad // tk,),
            in_specs=[
                pl.BlockSpec((B, tk), lambda k: (0, k)),     # x slice along E
                pl.BlockSpec((tk, P), lambda k: (k, 0)),     # wp slice along E
                _resident_spec((3, P), single_buffer),       # bp/gamma/beta
                _resident_spec((P, Cpad), single_buffer),    # wf
                _resident_spec((1, Cpad), single_buffer),    # bf
            ],
            out_specs=pl.BlockSpec((B, Cpad), lambda k: (0, 0)),
            scratch_shapes=[pltpu.VMEM((B, P), jnp.float32)],
        )
        return pl.pallas_call(
            mlp_head_tiled_kernel,
            out_shape=out_shape,
            grid_spec=grid_spec,
            compiler_params=cparams,
            cost_estimate=cost,
        )(x_flat, wp, bnb, wf, bf)

    try:
        out_padded = _call(single_buffer=True)
    except Exception:
        # Fallback if per-BlockSpec pipeline_mode is unavailable: default
        # double buffering (correctness identical, slightly more VMEM).
        out_padded = _call(single_buffer=False)
    return out_padded[:, :C]


# ----------------------------- params / reference ---------------------------


def init_params(key, embedding_dim, projection_dim, num_classes):
    k1, k2, k3, k4 = jax.random.split(key, 4)
    scale_p = 1.0 / jnp.sqrt(embedding_dim)
    scale_f = 1.0 / jnp.sqrt(projection_dim)
    return {
        # stored pre-transposed: (in, out); matmul weights kept in bf16.
        "wp": jax.random.uniform(k1, (embedding_dim, projection_dim),
                                 jnp.float32, -scale_p, scale_p
                                 ).astype(jnp.bfloat16),
        "bp": jax.random.uniform(k2, (1, projection_dim),
                                 jnp.float32, -scale_p, scale_p),
        "gamma": jnp.ones((1, projection_dim), jnp.float32),   # BN default init
        "beta": jnp.zeros((1, projection_dim), jnp.float32),
        "wf": jax.random.uniform(k3, (projection_dim, num_classes),
                                 jnp.float32, -scale_f, scale_f
                                 ).astype(jnp.bfloat16),
        "bf": jax.random.uniform(k4, (1, num_classes),
                                 jnp.float32, -scale_f, scale_f),
    }


def mlp_head_reference(x_nchw, params):
    """Pure-JAX reference of the same math (bf16 operands, f32 accumulation)."""
    B = x_nchw.shape[0]
    xf = x_nchw.reshape(B, -1).astype(jnp.bfloat16)
    h = jnp.dot(xf, params["wp"].astype(jnp.bfloat16),
                preferred_element_type=jnp.float32) + params["bp"]
    m = h.mean(0, keepdims=True)
    d = h - m
    v = (d * d).mean(0, keepdims=True)
    hn = jnp.maximum(params["gamma"] * d * jax.lax.rsqrt(v + BN_EPS)
                     + params["beta"], 0.0)
    return jnp.dot(hn.astype(jnp.bfloat16),
                   params["wf"].astype(jnp.bfloat16),
                   preferred_element_type=jnp.float32) + params["bf"]


# ----------------------------- main ------------------------------------------


if __name__ == "__main__":
    # Small, deterministic example shapes (identity backbone output, NCHW).
    B, C, H, W = 8, 4, 16, 16
    embedding_dim = C * H * W            # 1024 after flatten
    projection_dim = 128
    num_classes = 16

    key = jax.random.PRNGKey(0)
    kx, kp = jax.random.split(key)
    x = jax.random.normal(kx, (B, C, H, W), jnp.float32)
    params = init_params(kp, embedding_dim, projection_dim, num_classes)

    ref = mlp_head_reference(x, params)

    # 1) default path (single-step fast path at these shapes).
    out = mlp_head_forward(x, params)
    jax.block_until_ready(out)
    assert out.shape == (B, num_classes)
    assert out.dtype == jnp.float32
    assert jnp.allclose(out, ref, atol=2e-2, rtol=2e-2), \
        float(jnp.max(jnp.abs(out - ref)))

    # 2) force the tiled E-reduction path (tk=256 -> 4 grid steps) to exercise
    #    the accumulator / pl.when / single-buffered-resident structure too.
    out_tiled = mlp_head_forward(x, params, max_tk=256,
                                 allow_single_step=False)
    jax.block_until_ready(out_tiled)
    assert out_tiled.shape == (B, num_classes)
    assert jnp.allclose(out_tiled, ref, atol=2e-2, rtol=2e-2), \
        float(jnp.max(jnp.abs(out_tiled - ref)))

    print("KERNEL_OK")
</pallas_src>

<mosaic_0001>
module attributes {stable_mosaic.version = 11 : i64} {
  func.func @mlp_head_single_kernel(%arg0: i32, %arg1: memref<8x1024xbf16, #tpu.memory_space<vmem>>, %arg2: memref<1024x128xbf16, #tpu.memory_space<vmem>>, %arg3: memref<3x128xf32, #tpu.memory_space<vmem>>, %arg4: memref<128x128xbf16, #tpu.memory_space<vmem>>, %arg5: memref<1x128xf32, #tpu.memory_space<vmem>>, %arg6: memref<8x128xf32, #tpu.memory_space<vmem>>) attributes {dimension_semantics = [#tpu.dimension_semantics<arbitrary>], iteration_bounds = array<i64: 1>, scalar_prefetch = 0 : i64, scratch_operands = 0 : i64, tpu.core_type = #tpu.core_type<tc>, window_params = [{pipeline_mode = #tpu.pipeline_mode<synchronous>, transform_indices = @transform_0, window_bounds = array<i64: 8, 1024>}, {pipeline_mode = #tpu.pipeline_mode<synchronous>, transform_indices = @transform_1, window_bounds = array<i64: 1024, 128>}, {pipeline_mode = #tpu.pipeline_mode<synchronous>, transform_indices = @transform_2, window_bounds = array<i64: 3, 128>}, {pipeline_mode = #tpu.pipeline_mode<synchronous>, transform_indices = @transform_3, window_bounds = array<i64: 128, 128>}, {pipeline_mode = #tpu.pipeline_mode<synchronous>, transform_indices = @transform_4, window_bounds = array<i64: 1, 128>}, {pipeline_mode = #tpu.pipeline_mode<synchronous>, transform_indices = @transform_5, window_bounds = array<i64: 8, 128>}]} {
    %c0 = arith.constant 0 : index
    %c0_0 = arith.constant 0 : index
    %0 = vector.load %arg1[%c0, %c0_0] : memref<8x1024xbf16, #tpu.memory_space<vmem>>, vector<8x1024xbf16>
    %c0_1 = arith.constant 0 : index
    %c0_2 = arith.constant 0 : index
    %1 = vector.load %arg2[%c0_1, %c0_2] : memref<1024x128xbf16, #tpu.memory_space<vmem>>, vector<1024x128xbf16>
    %cst = arith.constant dense<0.000000e+00> : vector<8x128xf32>
    %2 = tpu.matmul %0, %1, %cst {dimension_numbers = #tpu.dot_dimension_numbers<[1], [0], [0], [1], [0, 0, 1, 1], [], []>} : vector<8x1024xbf16>, vector<1024x128xbf16>, vector<8x128xf32> -> vector<8x128xf32>
    %c0_3 = arith.constant 0 : index
    %c0_4 = arith.constant 0 : index
    %3 = vector.load %arg3[%c0_3, %c0_4] : memref<3x128xf32, #tpu.memory_space<vmem>>, vector<1x128xf32>
    %4 = vector.broadcast %3 : vector<1x128xf32> to vector<8x128xf32>
    %5 = arith.addf %2, %4 : vector<8x128xf32>
    %c0_5 = arith.constant 0 : index
    %c0_6 = arith.constant 0 : index
    %6 = vector.load %arg3[%c0_5, %c0_6] : memref<3x128xf32, #tpu.memory_space<vmem>>, vector<3x128xf32>
    %c0_7 = arith.constant 0 : index
    %c0_8 = arith.constant 0 : index
    %7 = vector.load %arg4[%c0_7, %c0_8] : memref<128x128xbf16, #tpu.memory_space<vmem>>, vector<128x128xbf16>
    %c0_9 = arith.constant 0 : index
    %c0_10 = arith.constant 0 : index
    %8 = vector.load %arg5[%c0_9, %c0_10] : memref<1x128xf32, #tpu.memory_space<vmem>>, vector<1x128xf32>
    %cst_11 = arith.constant dense<0.000000e+00> : vector<128xf32>
    %9 = vector.multi_reduction <add>, %5, %cst_11 [0] : vector<8x128xf32> to vector<128xf32>
    %10 = vector.shape_cast %9 : vector<128xf32> to vector<1x128xf32>
    %cst_12 = arith.constant 8.000000e+00 : f32
    %11 = vector.broadcast %cst_12 : f32 to vector<1x128xf32>
    %12 = arith.divf %10, %11 : vector<1x128xf32>
    %13 = vector.broadcast %12 : vector<1x128xf32> to vector<8x128xf32>
    %14 = arith.subf %5, %13 : vector<8x128xf32>
    %15 = arith.mulf %14, %14 : vector<8x128xf32>
    %cst_13 = arith.constant dense<0.000000e+00> : vector<128xf32>
    %16 = vector.multi_reduction <add>, %15, %cst_13 [0] : vector<8x128xf32> to vector<128xf32>
    %17 = vector.shape_cast %16 : vector<128xf32> to vector<1x128xf32>
    %cst_14 = arith.constant 8.000000e+00 : f32
    %18 = vector.broadcast %cst_14 : f32 to vector<1x128xf32>
    %19 = arith.divf %17, %18 : vector<1x128xf32>
    %20 = vector.extract_strided_slice %6 {offsets = [1, 0], sizes = [1, 128], strides = [1, 1]} : vector<3x128xf32> to vector<1x128xf32>
    %cst_15 = arith.constant 9.99999974E-6 : f32
    %21 = vector.broadcast %cst_15 : f32 to vector<1x128xf32>
    %22 = arith.addf %19, %21 : vector<1x128xf32>
    %23 = math.rsqrt %22 : vector<1x128xf32>
    %24 = arith.mulf %20, %23 : vector<1x128xf32>
    %25 = vector.broadcast %24 : vector<1x128xf32> to vector<8x128xf32>
    %26 = arith.mulf %14, %25 : vector<8x128xf32>
    %27 = vector.extract_strided_slice %6 {offsets = [2, 0], sizes = [1, 128], strides = [1, 1]} : vector<3x128xf32> to vector<1x128xf32>
    %28 = vector.broadcast %27 : vector<1x128xf32> to vector<8x128xf32>
    %29 = arith.addf %26, %28 : vector<8x128xf32>
    %cst_16 = arith.constant 0.000000e+00 : f32
    %30 = vector.broadcast %cst_16 : f32 to vector<8x128xf32>
    %31 = arith.maximumf %29, %30 : vector<8x128xf32>
    %32 = arith.truncf %31 : vector<8x128xf32> to vector<8x128xbf16>
    %cst_17 = arith.constant dense<0.000000e+00> : vector<8x128xf32>
    %33 = tpu.matmul %32, %7, %cst_17 {dimension_numbers = #tpu.dot_dimension_numbers<[1], [0], [0], [1], [0, 0, 1, 1], [], []>} : vector<8x128xbf16>, vector<128x128xbf16>, vector<8x128xf32> -> vector<8x128xf32>
    %34 = vector.broadcast %8 : vector<1x128xf32> to vector<8x128xf32>
    %35 = arith.addf %33, %34 : vector<8x128xf32>
    %c0_18 = arith.constant 0 : index
    %c0_19 = arith.constant 0 : index
    %36 = vector.load %arg6[%c0_18, %c0_19] : memref<8x128xf32, #tpu.memory_space<vmem>>, vector<8x128xf32>
    tpu.vector_store %arg6[%c0_18, %c0_19], %35 {strides = array<i32>} : memref<8x128xf32, #tpu.memory_space<vmem>>, vector<8x128xf32>,
    return
  }
  func.func @transform_0(%arg0: i32) -> (i32, i32) {
    %c0_i32 = arith.constant 0 : i32
    %c0_i32_0 = arith.constant 0 : i32
    %c0_i32_1 = arith.constant 0 : i32
    return %c0_i32, %c0_i32_0 : i32, i32
  }
  func.func @transform_1(%arg0: i32) -> (i32, i32) {
    %c0_i32 = arith.constant 0 : i32
    %c0_i32_0 = arith.constant 0 : i32
    %c0_i32_1 = arith.constant 0 : i32
    return %c0_i32, %c0_i32_0 : i32, i32
  }
  func.func @transform_2(%arg0: i32) -> (i32, i32) {
    %c0_i32 = arith.constant 0 : i32
    %c0_i32_0 = arith.constant 0 : i32
    %c0_i32_1 = arith.constant 0 : i32
    return %c0_i32, %c0_i32_0 : i32, i32
  }
  func.func @transform_3(%arg0: i32) -> (i32, i32) {
    %c0_i32 = arith.constant 0 : i32
    %c0_i32_0 = arith.constant 0 : i32
    %c0_i32_1 = arith.constant 0 : i32
    return %c0_i32, %c0_i32_0 : i32, i32
  }
  func.func @transform_4(%arg0: i32) -> (i32, i32) {
    %c0_i32 = arith.constant 0 : i32
    %c0_i32_0 = arith.constant 0 : i32
    %c0_i32_1 = arith.constant 0 : i32
    return %c0_i32, %c0_i32_0 : i32, i32
  }
  func.func @transform_5(%arg0: i32) -> (i32, i32) {
    %c0_i32 = arith.constant 0 : i32
    %c0_i32_0 = arith.constant 0 : i32
    %c0_i32_1 = arith.constant 0 : i32
    return %c0_i32, %c0_i32_0 : i32, i32
  }
}

</mosaic_0001>

<bundles_post_ra>
// kernel: tpu_custom_call.1
= control target key start
LH: loop header
LB: loop body
LE: loop exit
PB: predicated region body
PF: predicated region fallthrough
CT: control target
= control target key end

     0   :  { %10 = vsyncpa [#allocation3], 0  ;;  %s1415_s0 = inlined_call_operand.hbm [shape: bf16[8,1024], index: 0, kind: input, shape index: {}]   ;;  %s1416_s1 = inlined_call_operand.hbm [shape: bf16[1024,128], index: 1, kind: input, shape index: {}]   ;;  %s1417_s2 = inlined_call_operand.vmem [shape: f32[3,128], index: 2, kind: input, shape index: {}]   ;;  %s1418_s3 = inlined_call_operand.hbm [shape: bf16[128,128], index: 3, kind: input, shape index: {}]   ;;  %s1419_s4 = inlined_call_operand.vmem [shape: f32[1,128], index: 4, kind: input, shape index: {}]   ;;  %s1420_s5 = inlined_call_operand.hbm [shape: f32[8,128], index: 5, kind: output, shape index: {}]  }
   0x1   :  { %11 = vsyncpa [#allocation6], 0 }
   0x2   :  { %12 = vsyncpa [#allocation4], 0  ;;  %s1314_s18 = smov [#allocation5]   ;;  %s1220_s22 = scalar_lea.hbm %s1416_s1, 8192 }
   0x3   :  { %s28_s19 = sshll.u32 %s1314_s18, 4  ;;  %p1221_p0 = scmp.ne.s32.totalorder %s1416_s1, %s1220_s22  ;;  %s29_s19 = int_to_ptr.vmem [resolvable:$true] %s28_s19 }
   0x4   :  { %p1224_p1 = scmp.lt.u32.totalorder %s1220_s22, %s1416_s1 }
   0x6   :  { %p1226_p2 = pnand %p1224_p1, %p1221_p0 }
   0x8   :  { %1229 = shalt.err (!%p1226_p2)
}
   0x9   :  { %s1230_s27 = scalar_lea.vmem %s29_s19, 8192  ;;  %p1235_p4 = scmp.lt.s32.totalorder %s29_s19, %s29_s19 }
   0xa   :  { %p1231_p3 = scmp.ne.s32.totalorder %s29_s19, %s1230_s27  ;;  %p1236_p5 = scmp.lt.s32.totalorder %s1230_s27, %s1230_s27 }
   0xc   :  { %p1237_p6 = por %p1236_p5, %p1235_p4 }
   0xe   :  { %p1238_p7 = pnand %p1237_p6, %p1231_p3 }
  0x10   :  { %1241 = shalt.err (!%p1238_p7)
}
  0x11   :  { %s1315_s28 = smov 64   ;;  %s1316_s29 = smov 4  }
  0x12   :  { %34 = dma.hbm_to_vmem [thread:$0]  %s1416_s1, 8192, %s29_s19, [#allocation6], %s1315_s28, %s1315_s28, %s1316_s29  }
  0x13   :  { %s1317_s7 = smov [#allocation2]   ;;  %s1318_s9 = smov [#allocation7]  }
  0x14   :  { %s19_s8 = sshll.u32 %s1317_s7, 4  ;;  %s42_s10 = sshll.u32 %s1318_s9, 4  ;;  %s20_s8 = int_to_ptr.vmem [resolvable:$true] %s19_s8  ;;  %s43_s10 = int_to_ptr.vmem [resolvable:$true] %s42_s10 }
  0x15   :  { %s1242_s13 = scalar_lea.hbm %s1415_s0, 512 }
  0x16   :  { %p1243_p8 = scmp.ne.s32.totalorder %s1415_s0, %s1242_s13  ;;  %p1246_p9 = scmp.lt.u32.totalorder %s1242_s13, %s1415_s0 }
  0x18   :  { %p1248_p10 = pnand %p1246_p9, %p1243_p8 }
  0x1a   :  { %1251 = shalt.err (!%p1248_p10)
}
  0x1b   :  { %s1252_s1 = scalar_lea.vmem %s20_s8, 512  ;;  %p1257_p12 = scmp.lt.s32.totalorder %s20_s8, %s20_s8 }
  0x1c   :  { %p1253_p11 = scmp.ne.s32.totalorder %s20_s8, %s1252_s1  ;;  %p1258_p13 = scmp.lt.s32.totalorder %s1252_s1, %s1252_s1 }
  0x1e   :  { %p1259_p0 = por %p1258_p13, %p1257_p12 }
  0x20   :  { %p1260_p1 = pnand %p1259_p0, %p1253_p11 }
  0x22   :  { %1263 = shalt.err (!%p1260_p1)
}
  0x23   :  { %22 = dma.hbm_to_vmem [thread:$0]  %s1415_s0, 512, %s20_s8, [#allocation3]  }
  0x24   :  { %s1264_s22 = scalar_lea.hbm %s1418_s3, 1024 }
  0x25   :  { %p1265_p2 = scmp.ne.s32.totalorder %s1418_s3, %s1264_s22  ;;  %p1268_p3 = scmp.lt.u32.totalorder %s1264_s22, %s1418_s3 }
  0x27   :  { %p1270_p4 = pnand %p1268_p3, %p1265_p2 }
  0x29   :  { %1273 = shalt.err (!%p1270_p4)
}
  0x2a   :  { %s1274_s27 = scalar_lea.vmem %s43_s10, 1024  ;;  %p1279_p6 = scmp.lt.s32.totalorder %s43_s10, %s43_s10 }
  0x2b   :  { %p1275_p5 = scmp.ne.s32.totalorder %s43_s10, %s1274_s27  ;;  %p1280_p7 = scmp.lt.s32.totalorder %s1274_s27, %s1274_s27 }
  0x2d   :  { %p1281_p8 = por %p1280_p7, %p1279_p6 }
  0x2f   :  { %p1282_p9 = pnand %p1281_p8, %p1275_p5 }
  0x31   :  { %1285 = shalt.err (!%p1282_p9)
}
  0x32   :  { %48 = dma.hbm_to_vmem [thread:$0]  %s1418_s3, 1024, %s43_s10, [#allocation6], %s1315_s28, %s1315_s28, %s1316_s29  }
  0x33   :  { %1308 = dma.done.wait [#allocation3], 512  }
  0x34   :  { %1309 = vsyncadd [#allocation3], 4294966784 }
  0x35   :  { %1310 = dma.done.wait [#allocation6], 9216  }
  0x36   :  { %1311 = vsyncadd [#allocation6], 4294958080  ;;  %v1138_v0 = vld [vmem:[#allocation5 + $0x40] sm:$0xff]   ;;  %v1142_v4 = vld [vmem:[#allocation5 + $0x48] sm:$0xff]   ;;  %vm1320_vm0 = vmmov 0   ;;  %s1321_s9 = smov [#allocation8]  }
  0x37   :  { %v1139_v1 = vld [vmem:[#allocation5 + $0xc0] sm:$0xff]   ;;  %1013 = vmatprep.subr.bf16.mxu0 %v1138_v0  ;;  %v1143_v5 = vld [vmem:[#allocation5 + $0xc8] sm:$0xff]   ;;  %v1146_v8 = vld [vmem:[#allocation5 + $0x50] sm:$0xff]   ;;  %s921_s10 = sshll.u32 %s1321_s9, 4  ;;  %s922_s10 = int_to_ptr.vmem [resolvable:$true] %s921_s10 }
  0x38   :  { %v1140_v2 = vld [vmem:[#allocation5] sm:$0xff]   ;;  %1035 = vmatprep.subr.bf16.mxu1 %v1139_v1  ;;  %v1144_v6 = vld [vmem:[#allocation5 + $0x8] sm:$0xff]   ;;  %v1147_v9 = vld [vmem:[#allocation5 + $0xd0] sm:$0xff]   ;;  %p1291_p11 = scmp.lt.s32.totalorder %s922_s10, %s922_s10 }
  0x39   :  { %v1141_v3 = vld [vmem:[#allocation5 + $0x80] sm:$0xff]   ;;  %1014 = vmatpush3.bf16.msra.mxu0 %v1140_v2  ;;  %v1145_v7 = vld [vmem:[#allocation5 + $0x88] sm:$0xff]   ;;  %v1148_v10 = vld [vmem:[#allocation5 + $0x10] sm:$0xff]  }
  0x3a   :  { %1036 = vmatpush3.bf16.msra.mxu1 %v1141_v3  ;;  %1015 = vmatprep.subr.bf16.mxu0 %v1142_v4  ;;  %v1149_v11 = vld [vmem:[#allocation5 + $0x90] sm:$0xff]   ;;  %v1150_v12 = vld [vmem:[#allocation5 + $0x58] sm:$0xff]   ;;  %v1154_v16 = vld [vmem:[#allocation5 + $0x60] sm:$0xff]  }
  0x3b   :  { %1037 = vmatprep.subr.bf16.mxu1 %v1143_v5  ;;  %v1151_v13 = vld [vmem:[#allocation5 + $0xd8] sm:$0xff]   ;;  %v1155_v17 = vld [vmem:[#allocation5 + $0xe0] sm:$0xff]   ;;  %v1158_v20 = vld [vmem:[#allocation5 + $0x68] sm:$0xff]  }
  0x3c   :  { %v1152_v14 = vld [vmem:[#allocation5 + $0x18] sm:$0xff]   ;;  %v1156_v18 = vld [vmem:[#allocation5 + $0x20] sm:$0xff]   ;;  %v1159_v21 = vld [vmem:[#allocation5 + $0xe8] sm:$0xff]  }
  0x3d   :  { %1016 = vmatpush3.bf16.msra.mxu0 %v1144_v6  ;;  %v1153_v15 = vld [vmem:[#allocation5 + $0x98] sm:$0xff]   ;;  %v1157_v19 = vld [vmem:[#allocation5 + $0xa0] sm:$0xff]   ;;  %v1160_v22 = vld [vmem:[#allocation5 + $0x28] sm:$0xff]  }
  0x3e   :  { %1038 = vmatpush3.bf16.msra.mxu1 %v1145_v7  ;;  %1017 = vmatprep.subr.bf16.mxu0 %v1146_v8  ;;  %v1161_v23 = vld [vmem:[#allocation5 + $0xa8] sm:$0xff]   ;;  %v1162_v24 = vld [vmem:[#allocation5 + $0x70] sm:$0xff]   ;;  %v1166_v28 = vld [vmem:[#allocation5 + $0x78] sm:$0xff]  }
  0x3f   :  { %1039 = vmatprep.subr.bf16.mxu1 %v1147_v9  ;;  %v1163_v25 = vld [vmem:[#allocation5 + $0xf0] sm:$0xff]   ;;  %v1167_v29 = vld [vmem:[#allocation5 + $0xf8] sm:$0xff]   ;;  %v61_v32 = vld [vmem:[#allocation2] sm:$0xff] }
  0x40   :  { %v1164_v26 = vld [vmem:[#allocation5 + $0x30] sm:$0xff]   ;;  %v1168_v30 = vld [vmem:[#allocation5 + $0x38] sm:$0xff]   ;;  %v62_v33 = vld [vmem:[#allocation2 + $0x8] sm:$0xff]  ;;  %v932_v34 = vcombine.low %v61_v32, %v61_v32  ;;  %v933_v35 = vcombine.high %v61_v32, %v61_v32 }
  0x41   :  { %1018 = vmatpush3.bf16.msra.mxu0 %v1148_v10  ;;  %v1165_v27 = vld [vmem:[#allocation5 + $0xb0] sm:$0xff]   ;;  %v1169_v31 = vld [vmem:[#allocation5 + $0xb8] sm:$0xff]   ;;  %v934_v36 = vcombine.low %v62_v33, %v62_v33  ;;  %v935_v37 = vcombine.high %v62_v33, %v62_v33  ;;  %v1174_v38 = vld [vmem:[#allocation5 + $0x140] sm:$0xff]  }
  0x42   :  { %1040 = vmatpush3.bf16.msra.mxu1 %v1149_v11  ;;  %1019 = vmatprep.subr.bf16.mxu0 %v1150_v12  ;;  %v1175_v39 = vld [vmem:[#allocation5 + $0x1c0] sm:$0xff]   ;;  %v1178_v42 = vld [vmem:[#allocation5 + $0x148] sm:$0xff]   ;;  %v1182_v46 = vld [vmem:[#allocation5 + $0x150] sm:$0xff]  }
  0x43   :  { %1041 = vmatprep.subr.bf16.mxu1 %v1151_v13  ;;  %642 = vmatprep.mubr.bf16.mxu0 %v933_v35  ;;  %v1176_v40 = vld [vmem:[#allocation5 + $0x100] sm:$0xff]   ;;  %v1179_v43 = vld [vmem:[#allocation5 + $0x1c8] sm:$0xff]   ;;  %v1183_v47 = vld [vmem:[#allocation5 + $0x1d0] sm:$0xff]   ;;  %v1319_v13 = vmov 0.0  }
  0x44   :  { %682 = vmatprep.mubr.bf16.mxu1 %v935_v37  ;;  %v1177_v41 = vld [vmem:[#allocation5 + $0x180] sm:$0xff]   ;;  %v1180_v44 = vld [vmem:[#allocation5 + $0x108] sm:$0xff]   ;;  %v1184_v48 = vld [vmem:[#allocation5 + $0x110] sm:$0xff]  }
  0x45   :  { %1020 = vmatpush3.bf16.msra.mxu0 %v1152_v14  ;;  %v1181_v45 = vld [vmem:[#allocation5 + $0x188] sm:$0xff]   ;;  %v1185_v49 = vld [vmem:[#allocation5 + $0x190] sm:$0xff]   ;;  %v1186_v50 = vld [vmem:[#allocation5 + $0x158] sm:$0xff]  }
  0x46   :  { %1042 = vmatpush3.bf16.msra.mxu1 %v1153_v15  ;;  %1021 = vmatprep.subr.bf16.mxu0 %v1154_v16  ;;  %v1187_v51 = vld [vmem:[#allocation5 + $0x1d8] sm:$0xff]   ;;  %v1190_v54 = vld [vmem:[#allocation5 + $0x160] sm:$0xff]   ;;  %v1194_v58 = vld [vmem:[#allocation5 + $0x168] sm:$0xff]  }
  0x47   :  { %1043 = vmatprep.subr.bf16.mxu1 %v1155_v17  ;;  %v1188_v52 = vld [vmem:[#allocation5 + $0x118] sm:$0xff]   ;;  %v1191_v55 = vld [vmem:[#allocation5 + $0x1e0] sm:$0xff]   ;;  %v1195_v59 = vld [vmem:[#allocation5 + $0x1e8] sm:$0xff]  }
  0x48   :  { %v1189_v53 = vld [vmem:[#allocation5 + $0x198] sm:$0xff]   ;;  %v1192_v56 = vld [vmem:[#allocation5 + $0x120] sm:$0xff]   ;;  %v1196_v60 = vld [vmem:[#allocation5 + $0x128] sm:$0xff]  }
  0x49   :  { %1022 = vmatpush3.bf16.msra.mxu0 %v1156_v18  ;;  %v1193_v57 = vld [vmem:[#allocation5 + $0x1a0] sm:$0xff]   ;;  %v1197_v61 = vld [vmem:[#allocation5 + $0x1a8] sm:$0xff]   ;;  %v1198_v62 = vld [vmem:[#allocation5 + $0x170] sm:$0xff]  }
  0x4a   :  { %1044 = vmatpush3.bf16.msra.mxu1 %v1157_v19  ;;  %1023 = vmatprep.subr.bf16.mxu0 %v1158_v20  ;;  %v1199_v63 = vld [vmem:[#allocation5 + $0x1f0] sm:$0xff]   ;;  %v1202_v2 = vld [vmem:[#allocation5 + $0x178] sm:$0xff]   ;;  %v1210_v12 = vld [vmem:[#allocation7] sm:$0xff]  }
  0x4b   :  { %1045 = vmatprep.subr.bf16.mxu1 %v1159_v21  ;;  %v1200_v0 = vld [vmem:[#allocation5 + $0x130] sm:$0xff]   ;;  %v1203_v3 = vld [vmem:[#allocation5 + $0x1f8] sm:$0xff]   ;;  %v1211_v14 = vld [vmem:[#allocation7 + $0x8] sm:$0xff]  }
  0x4c   :  { %v1201_v1 = vld [vmem:[#allocation5 + $0x1b0] sm:$0xff]   ;;  %v1204_v4 = vld [vmem:[#allocation5 + $0x138] sm:$0xff]   ;;  %v1214_v17 = vld [vmem:[#allocation7 + $0x20] sm:$0xff]  }
  0x4d   :  { %1024 = vmatpush3.bf16.msra.mxu0 %v1160_v22  ;;  %v1205_v5 = vld [vmem:[#allocation5 + $0x1b8] sm:$0xff]   ;;  %v63_v6 = vld [vmem:[#allocation2 + $0x10] sm:$0xff]  ;;  %v1215_v18 = vld [vmem:[#allocation7 + $0x28] sm:$0xff]  }
  0x4e   :  { %1046 = vmatpush3.bf16.msra.mxu1 %v1161_v23  ;;  %1025 = vmatprep.subr.bf16.mxu0 %v1162_v24  ;;  %v936_v7 = vcombine.low %v63_v6, %v63_v6  ;;  %v937_v8 = vcombine.high %v63_v6, %v63_v6  ;;  %v64_v9 = vld [vmem:[#allocation2 + $0x18] sm:$0xff]  ;;  %v1212_v15 = vld [vmem:[#allocation7 + $0x10] sm:$0xff]   ;;  %v931_v23 = vld [vmem:[%s1417_s2] ss:$0 sm:$0xff] }
  0x4f   :  { %1047 = vmatprep.subr.bf16.mxu1 %v1163_v25  ;;  %v938_v10 = vcombine.low %v64_v9, %v64_v9  ;;  %v939_v11 = vcombine.high %v64_v9, %v64_v9  ;;  %v1213_v16 = vld [vmem:[#allocation7 + $0x18] sm:$0xff]   ;;  %v1216_v19 = vld [vmem:[#allocation7 + $0x30] sm:$0xff]  }
  0x50   :  { %v1217_v20 = vld [vmem:[#allocation7 + $0x38] sm:$0xff]  }
  0x51   :  { %1026 = vmatpush3.bf16.msra.mxu0 %v1164_v26 }
  0x52   :  { %1048 = vmatpush3.bf16.msra.mxu1 %v1165_v27  ;;  %1027 = vmatprep.subr.bf16.mxu0 %v1166_v28 }
  0x53   :  { %1049 = vmatprep.subr.bf16.mxu1 %v1167_v29 }
  0x55   :  { %1028 = vmatpush3.bf16.msra.mxu0 %v1168_v30 }
  0x56   :  { %1050 = vmatpush3.bf16.msra.mxu1 %v1169_v31  ;;  %1057 = vmatprep.subr.bf16.mxu0 %v1174_v38 }
  0x57   :  { %1079 = vmatprep.subr.bf16.mxu1 %v1175_v39 }
  0x58   :  { %643 = vmatmul.mubr.bf16.vlgmr.msra.gmra.mrb[0].mxu0 %v932_v34 }
  0x59   :  { %683 = vmatmul.mubr.bf16.vlgmr.msra.gmra.mrb[0].mxu1 %v934_v36  ;;  %1058 = vmatpush3.bf16.msra.mxu0 %v1176_v40 }
  0x5a   :  { %1080 = vmatpush3.bf16.msra.mxu1 %v1177_v41  ;;  %1059 = vmatprep.subr.bf16.mxu0 %v1178_v42 }
  0x5b   :  { %1081 = vmatprep.subr.bf16.mxu1 %v1179_v43  ;;  %722 = vmatprep.mubr.bf16.mxu0 %v937_v8 }
  0x5c   :  { %762 = vmatprep.mubr.bf16.mxu1 %v939_v11 }
  0x5d   :  { %1060 = vmatpush3.bf16.msra.mxu0 %v1180_v44 }
  0x5e   :  { %1082 = vmatpush3.bf16.msra.mxu1 %v1181_v45  ;;  %1061 = vmatprep.subr.bf16.mxu0 %v1182_v46 }
  0x5f   :  { %1083 = vmatprep.subr.bf16.mxu1 %v1183_v47 }
  0x61   :  { %1062 = vmatpush3.bf16.msra.mxu0 %v1184_v48 }
  0x62   :  { %1084 = vmatpush3.bf16.msra.mxu1 %v1185_v49  ;;  %1063 = vmatprep.subr.bf16.mxu0 %v1186_v50 }
  0x63   :  { %1085 = vmatprep.subr.bf16.mxu1 %v1187_v51 }
  0x65   :  { %1064 = vmatpush3.bf16.msra.mxu0 %v1188_v52 }
  0x66   :  { %1086 = vmatpush3.bf16.msra.mxu1 %v1189_v53  ;;  %1065 = vmatprep.subr.bf16.mxu0 %v1190_v54 }
  0x67   :  { %1087 = vmatprep.subr.bf16.mxu1 %v1191_v55 }
  0x69   :  { %1066 = vmatpush3.bf16.msra.mxu0 %v1192_v56 }
  0x6a   :  { %1088 = vmatpush3.bf16.msra.mxu1 %v1193_v57  ;;  %1067 = vmatprep.subr.bf16.mxu0 %v1194_v58 }
  0x6b   :  { %1089 = vmatprep.subr.bf16.mxu1 %v1195_v59 }
  0x6d   :  { %1068 = vmatpush3.bf16.msra.mxu0 %v1196_v60 }
  0x6e   :  { %1090 = vmatpush3.bf16.msra.mxu1 %v1197_v61  ;;  %1069 = vmatprep.subr.bf16.mxu0 %v1198_v62 }
  0x6f   :  { %1091 = vmatprep.subr.bf16.mxu1 %v1199_v63  ;;  %v808_v63 = vlaneseq }
  0x71   :  { %1070 = vmatpush3.bf16.msra.mxu0 %v1200_v0  ;;  %v809_v0 = vshrl.u32 %v808_v63, 7 }
  0x72   :  { %1092 = vmatpush3.bf16.msra.mxu1 %v1201_v1  ;;  %1071 = vmatprep.subr.bf16.mxu0 %v1202_v2  ;;  %v770_v1 = vld [vmem:[%s1417_s2] sm:$0x7]  ;;  %s1286_s2 = scalar_lea.vmem %s922_s10, 128 }
  0x73   :  { %1093 = vmatprep.subr.bf16.mxu1 %v1203_v3  ;;  %v810_v2 = vsub.s32 1, %v809_v0  ;;  %v815_v3 = vsub.s32 2, %v809_v0  ;;  %p1287_p10 = scmp.ne.s32.totalorder %s922_s10, %s1286_s2  ;;  %p1292_p12 = scmp.lt.s32.totalorder %s1286_s2, %s1286_s2 }
  0x75   :  { %1072 = vmatpush3.bf16.msra.mxu0 %v1204_v4  ;;  %p1293_p13 = por %p1292_p12, %p1291_p11 }
  0x76   :  { %1094 = vmatpush3.bf16.msra.mxu1 %v1205_v5  ;;  %1110 = vmatprep.subr.bf16.mxu0 %v1319_v13 }
  0x77   :  { %p1294_p0 = pnand %p1293_p13, %p1287_p10 }
  0x78   :  { %723 = vmatmul.mubr.bf16.vlgmr.msra.gmra.mrb[4].mxu0 %v936_v7  ;;  %v816_v7 = vrot.slane %v770_v1, %v815_v3 }
  0x79   :  { %763 = vmatmul.mubr.bf16.vlgmr.msra.gmra.mrb[4].mxu1 %v938_v10  ;;  %1111 = vmatpush3.bf16.msra.mxu0 %v1210_v12  ;;  %v1004_v12 = vld [vmem:[%s1419_s4] ss:$0 sm:$0xff] }
  0x7a   :  { %1112 = vmatprep.subr.bf16.mxu0 %v1319_v13  ;;  %1126 = vmatprep.mubr.msk.bf16.mxu0 %vm1320_vm0, %v1319_v13 }
  0x7d   :  { %1113 = vmatpush3.bf16.msra.mxu0 %v1211_v14 }
  0x7e   :  { %1114 = vmatprep.subr.bf16.mxu0 %v1319_v13 }
  0x81   :  { %1115 = vmatpush3.bf16.msra.mxu0 %v1212_v15 }
  0x82   :  { %1116 = vmatprep.subr.bf16.mxu0 %v1319_v13 }
  0x85   :  { %1117 = vmatpush3.bf16.msra.mxu0 %v1213_v16 }
  0x86   :  { %1118 = vmatprep.subr.bf16.mxu0 %v1319_v13 }
  0x89   :  { %1119 = vmatpush3.bf16.msra.mxu0 %v1214_v17 }
  0x8a   :  { %1120 = vmatprep.subr.bf16.mxu0 %v1319_v13 }
  0x8d   :  { %1121 = vmatpush3.bf16.msra.mxu0 %v1215_v18 }
  0x8e   :  { %1122 = vmatprep.subr.bf16.mxu0 %v1319_v13 }
  0x91   :  { %1123 = vmatpush3.bf16.msra.mxu0 %v1216_v19 }
  0x92   :  { %1124 = vmatprep.subr.bf16.mxu0 %v1319_v13 }
  0x95   :  { %1125 = vmatpush3.bf16.msra.mxu0 %v1217_v20 }
 0x12b   :  { %v1029_v21 = vpop.f32.mrb[0].mxu0 }
 0x12c   :  { %v1051_v22 = vpop.f32.mrb[0].mxu1  ;;  %v1030_v24 = vpop.f32.mrb[1].mxu0 }
 0x12d   :  { %v1052_v25 = vpop.f32.mrb[1].mxu1  ;;  %v1031_v26 = vadd.f32 %v1030_v24, %v1029_v21  ;;  %v1032_v28 = vpop.f32.mrb[2].mxu0 }
 0x12e   :  { %v1053_v27 = vadd.f32 %v1052_v25, %v1051_v22  ;;  %v1054_v29 = vpop.f32.mrb[2].mxu1  ;;  %v1033_v30 = vpop.f32.mrb[3].mxu0 }
 0x12f   :  { %v1055_v31 = vpop.f32.mrb[3].mxu1  ;;  %v645_v32 = vadd.f32 %v1031_v26, %v931_v23 }
 0x131   :  { %v685_v33 = vadd.f32 %v1053_v27, %v645_v32 }
 0x14b   :  { %v1073_v34 = vpop.f32.mrb[4].mxu0 }
 0x14c   :  { %v1095_v35 = vpop.f32.mrb[4].mxu1  ;;  %v1074_v36 = vpop.f32.mrb[5].mxu0 }
 0x14d   :  { %v1096_v37 = vpop.f32.mrb[5].mxu1  ;;  %v1075_v38 = vadd.f32 %v1074_v36, %v1073_v34  ;;  %v1076_v40 = vpop.f32.mrb[6].mxu0 }
 0x14e   :  { %v1097_v39 = vadd.f32 %v1096_v37, %v1095_v35  ;;  %v1098_v41 = vpop.f32.mrb[6].mxu1  ;;  %v1077_v42 = vpop.f32.mrb[7].mxu0 }
 0x14f   :  { %v1099_v43 = vpop.f32.mrb[7].mxu1  ;;  %v725_v44 = vadd.f32 %v1075_v38, %v685_v33 }
 0x151   :  { %v765_v45 = vadd.f32 %v1097_v39, %v725_v44 }
 0x153   :  { %v788_v46 = vrot.slane %v765_v45, 4 }
 0x155   :  { %v789_v47 = vadd.f32 %v788_v46, %v765_v45 }
 0x157   :  { %v790_v48 = vrot.slane %v789_v47, 2 }
 0x159   :  { %v791_v49 = vadd.f32 %v790_v48, %v789_v47 }
 0x15b   :  { %v792_v50 = vrot.slane %v791_v49, 1 }
 0x15d   :  { %v793_v51 = vadd.f32 %v792_v50, %v791_v49 }
 0x15f   :  { %v795_v52 = vmul.f32 0.125, %v793_v51 }
 0x161   :  { %v796_v53 = vsub.f32 %v765_v45, %v795_v52 }
 0x163   :  { %v797_v54 = vmul.f32 %v796_v53, %v796_v53 }
 0x165   :  { %v798_v55 = vrot.slane %v797_v54, 4 }
 0x167   :  { %v799_v56 = vadd.f32 %v798_v55, %v797_v54 }
 0x169   :  { %v800_v57 = vrot.slane %v799_v56, 2 }
 0x16b   :  { %v801_v58 = vadd.f32 %v800_v57, %v799_v56 }
 0x16d   :  { %v802_v59 = vrot.slane %v801_v58, 1 }
 0x16f   :  { %v803_v60 = vadd.f32 %v802_v59, %v801_v58 }
 0x171   :  { %v804_v61 = vmul.f32 0.125, %v803_v60 }
 0x173   :  { %v805_v62 = vadd.f32 1e-05, %v804_v61 }
 0x175   :  { %1218 = vrsqrt.f32 %v805_v62 }
 0x17f   :  { %v1219_v4 = vpop.eup %1218 }
 0x180   :  { %v807_v5 = vmul.f32 %v1219_v4, %v770_v1 }
 0x182   :  { %v811_v6 = vrot.slane %v807_v5, %v810_v2 }
 0x184   :  { %v812_v8 = vmul.f32 %v811_v6, %v796_v53 }
 0x186   :  { %v817_v9 = vadd.f32 %v816_v7, %v812_v8 }
 0x188   :  { %v818_v10 = vmax.f32 %v817_v9, 0.0 }
 0x18a   :  { %v819_v11 = vpack.c.bf16 %v818_v10, %v818_v10 }
 0x18c   :  { %1127 = vmatmul.mubr.bf16.vlgmr.msra.gmra.mrb[8].mxu0 %v819_v11 }
 0x25f   :  { %v908_v13 = vpop.f32.mrb[8].mxu0 }
 0x260   :  { %v909_v14 = vadd.f32 %v1004_v12, %v908_v13  ;;  %v1128_v15 = vpop.f32.mrb[9].mxu0 }
 0x261   :  { %v911_v16 = vpop.f32.mrb[10].mxu0 }
 0x262   :  { %914 = vst [vmem:[#allocation8] sm:$0xff] %v909_v14  ;;  %v1129_v17 = vpop.f32.mrb[11].mxu0 }
 0x263   :  { %1297 = shalt.err (!%p1294_p0)
}
 0x264   :  { %s1298_s4 = scalar_lea.hbm %s1420_s5, 128 }
 0x265   :  { %p1299_p1 = scmp.ne.s32.totalorder %s1420_s5, %s1298_s4  ;;  %p1302_p2 = scmp.lt.u32.totalorder %s1298_s4, %s1420_s5 }
 0x267   :  { %p1304_p3 = pnand %p1302_p2, %p1299_p1 }
 0x269   :  { %1307 = shalt.err (!%p1304_p3)
}
 0x26a   :  { %924 = dma.vmem_to_hbm [thread:$0]  %s922_s10, 128, %s1420_s5, [#allocation4]  }
 0x26b   :  { %1312 = dma.done.wait [#allocation4], 128  }
 0x26c   :  { %1313 = vsyncadd [#allocation4], 4294967168 }
 0x26d   :  { %928 = vsyncpa [#allocation3], 1 }
 0x26e   :  { %929 = vsyncpa [#allocation6], 1 }
 0x26f   :  { %930 = vsyncpa [#allocation4], 1 }

</bundles_post_ra>
